<compile_context>
chip_gen: v6e
topology: v6e:2x2x1
jax: 0.10.0
libtpu: 0.0.40
codegen_flags: <defaults>
</compile_context>

<pallas_src>
import functools

import jax
import jax.numpy as jnp
from jax.experimental import pallas as pl
from jax.experimental.pallas import tpu as pltpu


def _dice_loss_kernel(pred_ref, gold_ref, out_ref,
                      acc_pg, acc_p, acc_g,
                      *, h_total, tile_h, needs_mask):
    i = pl.program_id(0)

    @pl.when(i == 0)
    def _init():
        acc_pg[...] = jnp.zeros_like(acc_pg)
        acc_p[...] = jnp.zeros_like(acc_p)
        acc_g[...] = jnp.zeros_like(acc_g)

    p = pred_ref[...].astype(jnp.float32)   # (TILE_H, W)
    g = gold_ref[...].astype(jnp.float32)   # (TILE_H, W)

    if needs_mask:
        # Last tile may read past H; zero out the out-of-range rows.
        rows = i * tile_h + jax.lax.broadcasted_iota(jnp.int32, p.shape, 0)
        valid = rows < h_total
        p = jnp.where(valid, p, 0.0)
        g = jnp.where(valid, g, 0.0)

    # Pure-VPU accumulation (vmul + vadd per vreg); no per-tile XLU reduce.
    acc_pg[...] += p * g
    acc_p[...] += p
    acc_g[...] += g

    @pl.when(i == pl.num_programs(0) - 1)
    def _finalize():
        intersection = jnp.sum(acc_pg[...])
        sum_p = jnp.sum(acc_p[...])
        sum_g = jnp.sum(acc_g[...])
        dice = (2.0 * intersection) / (sum_g + sum_p + 1e-8)
        out_ref[0, 0] = 1.0 - dice


def _choose_tile_h(H, W, pred_itemsize, gold_itemsize):
    """Largest row tile that keeps (2 double-buffered inputs + 3 f32
    accumulators) comfortably inside scoped VMEM on all TPU generations."""
    budget = 24 * 1024 * 1024  # headroom within 32 MiB scoped / 64 MiB v7x
    per_row = 2 * W * (pred_itemsize + gold_itemsize) + 3 * W * 4
    max_rows = max(8, budget // per_row)
    tile = int(min(H, 512, max_rows))
    if tile < H:
        tile = max(8, (tile // 8) * 8)   # keep (8, 128) block tiling happy
    return tile


def dice_loss(pred, gold):
    """pred: [B, C, H, W]; gold: [B, H, W]. Returns scalar f32 loss.

    Only pred[0, 0] and gold[0] participate (matches the PyTorch module).
    Inputs may be any float/int dtype; they are cast to f32 inside the kernel.
    """
    B, C, H, W = pred.shape
    assert gold.shape[1:] == (H, W), "gold must be [B, H, W] matching pred H,W"

    tile_h = _choose_tile_h(H, W, pred.dtype.itemsize, gold.dtype.itemsize)
    grid_h = pl.cdiv(H, tile_h)
    needs_mask = (H % tile_h) != 0

    kernel = functools.partial(
        _dice_loss_kernel,
        h_total=H, tile_h=tile_h, needs_mask=needs_mask)

    out = pl.pallas_call(
        kernel,
        out_shape=jax.ShapeDtypeStruct((1, 1), jnp.float32),
        grid=(grid_h,),
        in_specs=[
            # pred [B, C, H, W] -> kernel sees (TILE_H, W) slice of pred[0, 0]
            pl.BlockSpec((None, None, tile_h, W), lambda i: (0, 0, i, 0)),
            # gold [B, H, W]    -> kernel sees (TILE_H, W) slice of gold[0]
            pl.BlockSpec((None, tile_h, W), lambda i: (0, i, 0)),
        ],
        out_specs=pl.BlockSpec((1, 1), lambda i: (0, 0),
                               memory_space=pltpu.SMEM),
        scratch_shapes=[
            pltpu.VMEM((tile_h, W), jnp.float32),  # running sum of p*g
            pltpu.VMEM((tile_h, W), jnp.float32),  # running sum of p
            pltpu.VMEM((tile_h, W), jnp.float32),  # running sum of g
        ],
        compiler_params=pltpu.CompilerParams(
            dimension_semantics=("arbitrary",),
            vmem_limit_bytes=32 * 1024 * 1024,
        ),
    )(pred, gold)
    # TODO(synk): optional v7x 2-TensorCore split of the row scan not implemented.
    return out[0, 0]


def _reference(pred, gold):
    g = gold[0].astype(jnp.float32)
    p = pred[0, 0, :, :].astype(jnp.float32)
    inter = jnp.sum(g.reshape(-1) * p.reshape(-1))
    dice = 2.0 * inter / (jnp.sum(g) + jnp.sum(p) + 1e-8)
    return 1.0 - dice


if __name__ == "__main__":
    key = jax.random.PRNGKey(0)
    k1, k2 = jax.random.split(key)
    B, C, H, W = 2, 4, 16, 16
    pred = jax.random.uniform(k1, (B, C, H, W), dtype=jnp.float32)
    # binary-ish ground-truth mask
    gold = (jax.random.uniform(k2, (B, H, W), dtype=jnp.float32) > 0.5).astype(
        jnp.float32)

    loss = dice_loss(pred, gold)
    jax.block_until_ready(loss)

    ref = _reference(pred, gold)
    assert jnp.allclose(loss, ref, atol=1e-5, rtol=1e-5), (loss, ref)
    print("KERNEL_OK")
</pallas_src>

<mosaic_0001>
module attributes {stable_mosaic.version = 11 : i64} {
  func.func @_dice_loss_kernel(%arg0: i32, %arg1: memref<1x1x16x16xf32, #tpu.memory_space<vmem>>, %arg2: memref<1x16x16xf32, #tpu.memory_space<vmem>>, %arg3: memref<1x1xf32, #tpu.memory_space<smem>>, %arg4: memref<16x16xf32, #tpu.memory_space<vmem>>, %arg5: memref<16x16xf32, #tpu.memory_space<vmem>>, %arg6: memref<16x16xf32, #tpu.memory_space<vmem>>) attributes {dimension_semantics = [#tpu.dimension_semantics<arbitrary>], iteration_bounds = array<i64: 1>, scalar_prefetch = 0 : i64, scratch_operands = 3 : i64, tpu.core_type = #tpu.core_type<tc>, window_params = [{transform_indices = @transform_0, window_bounds = array<i64: 1, 1, 16, 16>}, {transform_indices = @transform_1, window_bounds = array<i64: 1, 16, 16>}, {transform_indices = @transform_2, window_bounds = array<i64: 1, 1>}]} {
    %c0_i32 = arith.constant 0 : i32
    %0 = arith.cmpi eq, %arg0, %c0_i32 : i32
    %1 = arith.extui %0 : i1 to i32
    %c0_i32_0 = arith.constant 0 : i32
    %2 = arith.cmpi ne, %1, %c0_i32_0 : i32
    scf.if %2 {
      %cst = arith.constant 0.000000e+00 : f32
      %20 = vector.broadcast %cst : f32 to vector<16x16xf32>
      %c0_21 = arith.constant 0 : index
      %c0_22 = arith.constant 0 : index
      %21 = vector.load %arg4[%c0_21, %c0_22] : memref<16x16xf32, #tpu.memory_space<vmem>>, vector<16x16xf32>
      tpu.vector_store %arg4[%c0_21, %c0_22], %20 {strides = array<i32>} : memref<16x16xf32, #tpu.memory_space<vmem>>, vector<16x16xf32>,
      %cst_23 = arith.constant 0.000000e+00 : f32
      %22 = vector.broadcast %cst_23 : f32 to vector<16x16xf32>
      %c0_24 = arith.constant 0 : index
      %c0_25 = arith.constant 0 : index
      %23 = vector.load %arg5[%c0_24, %c0_25] : memref<16x16xf32, #tpu.memory_space<vmem>>, vector<16x16xf32>
      tpu.vector_store %arg5[%c0_24, %c0_25], %22 {strides = array<i32>} : memref<16x16xf32, #tpu.memory_space<vmem>>, vector<16x16xf32>,
      %cst_26 = arith.constant 0.000000e+00 : f32
      %24 = vector.broadcast %cst_26 : f32 to vector<16x16xf32>
      %c0_27 = arith.constant 0 : index
      %c0_28 = arith.constant 0 : index
      %25 = vector.load %arg6[%c0_27, %c0_28] : memref<16x16xf32, #tpu.memory_space<vmem>>, vector<16x16xf32>
      tpu.vector_store %arg6[%c0_27, %c0_28], %24 {strides = array<i32>} : memref<16x16xf32, #tpu.memory_space<vmem>>, vector<16x16xf32>,
    } else {
    }
    %c0 = arith.constant 0 : index
    %c0_1 = arith.constant 0 : index
    %c0_2 = arith.constant 0 : index
    %c0_3 = arith.constant 0 : index
    %3 = vector.load %arg1[%c0, %c0_1, %c0_2, %c0_3] : memref<1x1x16x16xf32, #tpu.memory_space<vmem>>, vector<1x1x16x16xf32>
    %4 = vector.shape_cast %3 : vector<1x1x16x16xf32> to vector<16x16xf32>
    %c0_4 = arith.constant 0 : index
    %c0_5 = arith.constant 0 : index
    %c0_6 = arith.constant 0 : index
    %5 = vector.load %arg2[%c0_4, %c0_5, %c0_6] : memref<1x16x16xf32, #tpu.memory_space<vmem>>, vector<1x16x16xf32>
    %6 = vector.shape_cast %5 : vector<1x16x16xf32> to vector<16x16xf32>
    %c0_7 = arith.constant 0 : index
    %c0_8 = arith.constant 0 : index
    %7 = vector.load %arg4[%c0_7, %c0_8] : memref<16x16xf32, #tpu.memory_space<vmem>>, vector<16x16xf32>
    %8 = arith.mulf %4, %6 : vector<16x16xf32>
    %9 = arith.addf %7, %8 : vector<16x16xf32>
    %c0_9 = arith.constant 0 : index
    %c0_10 = arith.constant 0 : index
    %10 = vector.load %arg4[%c0_9, %c0_10] : memref<16x16xf32, #tpu.memory_space<vmem>>, vector<16x16xf32>
    tpu.vector_store %arg4[%c0_9, %c0_10], %9 {strides = array<i32>} : memref<16x16xf32, #tpu.memory_space<vmem>>, vector<16x16xf32>,
    %c0_11 = arith.constant 0 : index
    %c0_12 = arith.constant 0 : index
    %11 = vector.load %arg5[%c0_11, %c0_12] : memref<16x16xf32, #tpu.memory_space<vmem>>, vector<16x16xf32>
    %12 = arith.addf %11, %4 : vector<16x16xf32>
    %c0_13 = arith.constant 0 : index
    %c0_14 = arith.constant 0 : index
    %13 = vector.load %arg5[%c0_13, %c0_14] : memref<16x16xf32, #tpu.memory_space<vmem>>, vector<16x16xf32>
    tpu.vector_store %arg5[%c0_13, %c0_14], %12 {strides = array<i32>} : memref<16x16xf32, #tpu.memory_space<vmem>>, vector<16x16xf32>,
    %c0_15 = arith.constant 0 : index
    %c0_16 = arith.constant 0 : index
    %14 = vector.load %arg6[%c0_15, %c0_16] : memref<16x16xf32, #tpu.memory_space<vmem>>, vector<16x16xf32>
    %15 = arith.addf %14, %6 : vector<16x16xf32>
    %c0_17 = arith.constant 0 : index
    %c0_18 = arith.constant 0 : index
    %16 = vector.load %arg6[%c0_17, %c0_18] : memref<16x16xf32, #tpu.memory_space<vmem>>, vector<16x16xf32>
    tpu.vector_store %arg6[%c0_17, %c0_18], %15 {strides = array<i32>} : memref<16x16xf32, #tpu.memory_space<vmem>>, vector<16x16xf32>,
    %c0_i32_19 = arith.constant 0 : i32
    %17 = arith.cmpi eq, %arg0, %c0_i32_19 : i32
    %18 = arith.extui %17 : i1 to i32
    %c0_i32_20 = arith.constant 0 : i32
    %19 = arith.cmpi ne, %18, %c0_i32_20 : i32
    scf.if %19 {
      %c0_21 = arith.constant 0 : index
      %c0_22 = arith.constant 0 : index
      %20 = vector.load %arg4[%c0_21, %c0_22] : memref<16x16xf32, #tpu.memory_space<vmem>>, vector<16x16xf32>
      %21 = vector.shape_cast %20 : vector<16x16xf32> to vector<1x16x16xf32>
      %cst = arith.constant dense<0.000000e+00> : vector<1xf32>
      %22 = vector.multi_reduction <add>, %21, %cst [1, 2] : vector<1x16x16xf32> to vector<1xf32>
      %23 = vector.shape_cast %22 : vector<1xf32> to vector<1x1x1xf32>
      %24 = vector.extract %23[0, 0, 0] : f32 from vector<1x1x1xf32>
      %c0_23 = arith.constant 0 : index
      %c0_24 = arith.constant 0 : index
      %25 = vector.load %arg5[%c0_23, %c0_24] : memref<16x16xf32, #tpu.memory_space<vmem>>, vector<16x16xf32>
      %26 = vector.shape_cast %25 : vector<16x16xf32> to vector<1x16x16xf32>
      %cst_25 = arith.constant dense<0.000000e+00> : vector<1xf32>
      %27 = vector.multi_reduction <add>, %26, %cst_25 [1, 2] : vector<1x16x16xf32> to vector<1xf32>
      %28 = vector.shape_cast %27 : vector<1xf32> to vector<1x1x1xf32>
      %29 = vector.extract %28[0, 0, 0] : f32 from vector<1x1x1xf32>
      %c0_26 = arith.constant 0 : index
      %c0_27 = arith.constant 0 : index
      %30 = vector.load %arg6[%c0_26, %c0_27] : memref<16x16xf32, #tpu.memory_space<vmem>>, vector<16x16xf32>
      %31 = vector.shape_cast %30 : vector<16x16xf32> to vector<1x16x16xf32>
      %cst_28 = arith.constant dense<0.000000e+00> : vector<1xf32>
      %32 = vector.multi_reduction <add>, %31, %cst_28 [1, 2] : vector<1x16x16xf32> to vector<1xf32>
      %33 = vector.shape_cast %32 : vector<1xf32> to vector<1x1x1xf32>
      %34 = vector.extract %33[0, 0, 0] : f32 from vector<1x1x1xf32>
      %cst_29 = arith.constant 2.000000e+00 : f32
      %35 = arith.mulf %cst_29, %24 : f32
      %36 = arith.addf %34, %29 : f32
      %cst_30 = arith.constant 9.99999993E-9 : f32
      %37 = arith.addf %36, %cst_30 : f32
      %38 = arith.divf %35, %37 : f32
      %cst_31 = arith.constant 1.000000e+00 : f32
      %39 = arith.subf %cst_31, %38 : f32
      %c0_32 = arith.constant 0 : index
      %c0_33 = arith.constant 0 : index
      %40 = memref.load %arg3[%c0_32, %c0_33] : memref<1x1xf32, #tpu.memory_space<smem>>
      memref.store %39, %arg3[%c0_32, %c0_33] : memref<1x1xf32, #tpu.memory_space<smem>>
    } else {
    }
    return
  }
  func.func @transform_0(%arg0: i32) -> (i32, i32, i32, i32) {
    %c0_i32 = arith.constant 0 : i32
    %c0_i32_0 = arith.constant 0 : i32
    %c0_i32_1 = arith.constant 0 : i32
    %c0_i32_2 = arith.constant 0 : i32
    return %c0_i32, %c0_i32_0, %arg0, %c0_i32_1 : i32, i32, i32, i32
  }
  func.func @transform_1(%arg0: i32) -> (i32, i32, i32) {
    %c0_i32 = arith.constant 0 : i32
    %c0_i32_0 = arith.constant 0 : i32
    %c0_i32_1 = arith.constant 0 : i32
    return %c0_i32, %arg0, %c0_i32_0 : i32, i32, i32
  }
  func.func @transform_2(%arg0: i32) -> (i32, i32) {
    %c0_i32 = arith.constant 0 : i32
    %c0_i32_0 = arith.constant 0 : i32
    %c0_i32_1 = arith.constant 0 : i32
    return %c0_i32, %c0_i32_0 : i32, i32
  }
}

</mosaic_0001>

<bundles_post_ra>
// kernel: tpu_custom_call.1
= control target key start
LH: loop header
LB: loop body
LE: loop exit
PB: predicated region body
PF: predicated region fallthrough
CT: control target
= control target key end

     0   :  { %7 = vsyncpa [#allocation6], 0  ;;  %s264_s0 = inlined_call_operand.hbm [shape: f32[2,4,16,16], index: 0, kind: input, shape index: {}]   ;;  %s265_s1 = inlined_call_operand.hbm [shape: f32[2,16,16], index: 1, kind: input, shape index: {}]   ;;  %s266_s2 = inlined_call_operand.hbm [shape: f32[1,1], index: 2, kind: output, shape index: {}]  }
   0x1   :  { %8 = vsyncpa [#allocation9], 0 }
   0x2   :  { %9 = vsyncpa [#allocation7], 0  ;;  %s216_s9 = smov [#allocation5]  }
   0x3   :  { %s15_s10 = sshll.u32 %s216_s9, 4  ;;  %s16_s10 = int_to_ptr.vmem [resolvable:$true] %s15_s10 }
   0x4   :  { %s170_s11 = scalar_lea.vmem %s16_s10, 256  ;;  %p175_p1 = scmp.lt.s32.totalorder %s16_s10, %s16_s10 }
   0x5   :  { %p171_p0 = scmp.ne.s32.totalorder %s16_s10, %s170_s11  ;;  %p176_p2 = scmp.lt.s32.totalorder %s170_s11, %s170_s11 }
   0x7   :  { %p177_p3 = por %p176_p2, %p175_p1 }
   0x9   :  { %p178_p4 = pnand %p177_p3, %p171_p0 }
   0xb   :  { %181 = shalt.err (!%p178_p4)
}
   0xc   :  { %s217_s12 = smov 128   ;;  %s218_s13 = smov 8  }
   0xd   :  { %21 = dma.hbm_to_vmem [thread:$0]  %s264_s0, 256, %s16_s10, [#allocation6], %s217_s12, %s217_s12, %s218_s13  }
   0xe   :  { %s219_s16 = smov [#allocation8]  }
   0xf   :  { %s27_s17 = sshll.u32 %s219_s16, 4  ;;  %s28_s17 = int_to_ptr.vmem [resolvable:$true] %s27_s17 }
  0x10   :  { %s190_s18 = scalar_lea.vmem %s28_s17, 256  ;;  %p195_p6 = scmp.lt.s32.totalorder %s28_s17, %s28_s17 }
  0x11   :  { %p191_p5 = scmp.ne.s32.totalorder %s28_s17, %s190_s18  ;;  %p196_p7 = scmp.lt.s32.totalorder %s190_s18, %s190_s18 }
  0x13   :  { %p197_p8 = por %p196_p7, %p195_p6 }
  0x15   :  { %p198_p9 = pnand %p197_p8, %p191_p5 }
  0x17   :  { %201 = shalt.err (!%p198_p9)
}
  0x18   :  { %33 = dma.hbm_to_vmem [thread:$0]  %s265_s1, 256, %s28_s17, [#allocation9], %s217_s12, %s217_s12, %s218_s13  }
  0x19   :  { %210 = dma.done.wait [#allocation6], 256  }
  0x1a   :  { %211 = vsyncadd [#allocation6], 4294967040 }
  0x1b   :  { %212 = dma.done.wait [#allocation9], 256  }
  0x1c   :  { %213 = vsyncadd [#allocation9], 4294967040  ;;  %vm44_vm0 = vcmask 130048   ;;  %v220_v0 = vmov 0.0   ;;  %v53_v1 = vld [vmem:[#allocation8] sm:$0xff]  ;;  %v54_v2 = vld [vmem:[#allocation8 + $0x8] sm:$0xff] }
  0x1d   :  { %49 = vst.msk [vmem:[#allocation4] sm:$0xff] %vm44_vm0, %v220_v0  ;;  %50 = vst.msk [vmem:[#allocation4 + $0x8] sm:$0xff] %vm44_vm0, %v220_v0  ;;  %v51_v3 = vld [vmem:[#allocation5] sm:$0xff]  ;;  %v52_v6 = vld [vmem:[#allocation5 + $0x8] sm:$0xff]  ;;  %s221_s28 = smov [#allocation10]  }
  0x1e   :  { %45 = vst.msk [vmem:[#allocation2] sm:$0xff] %vm44_vm0, %v220_v0  ;;  %46 = vst.msk [vmem:[#allocation2 + $0x8] sm:$0xff] %vm44_vm0, %v220_v0  ;;  %v57_v7 = vmul.f32 %v53_v1, %v51_v3  ;;  %v58_v12 = vmul.f32 %v54_v2, %v52_v6 }
  0x1f   :  { %47 = vst.msk [vmem:[#allocation3] sm:$0xff] %vm44_vm0, %v220_v0  ;;  %48 = vst.msk [vmem:[#allocation3 + $0x8] sm:$0xff] %vm44_vm0, %v220_v0 }
  0x24   :  { %v70_v4 = vld [vmem:[#allocation4] sm:$0xff]  ;;  %v71_v5 = vld [vmem:[#allocation4 + $0x8] sm:$0xff] }
  0x25   :  { %v72_v8 = vadd.f32 %v70_v4, %v53_v1  ;;  %v73_v9 = vadd.f32 %v71_v5, %v54_v2  ;;  %v55_v10 = vld [vmem:[#allocation2] sm:$0xff]  ;;  %v56_v11 = vld [vmem:[#allocation2 + $0x8] sm:$0xff] }
  0x26   :  { %v64_v13 = vld [vmem:[#allocation3] sm:$0xff]  ;;  %v59_v14 = vadd.f32 %v57_v7, %v55_v10  ;;  %v65_v15 = vld [vmem:[#allocation3 + $0x8] sm:$0xff]  ;;  %v60_v17 = vadd.f32 %v58_v12, %v56_v11 }
  0x27   :  { %v66_v16 = vadd.f32 %v64_v13, %v51_v3  ;;  %74 = vst.msk [vmem:[#allocation4] sm:$0xff] %vm44_vm0, %v72_v8  ;;  %75 = vst.msk [vmem:[#allocation4 + $0x8] sm:$0xff] %vm44_vm0, %v73_v9  ;;  %v67_v18 = vadd.f32 %v65_v15, %v52_v6 }
  0x28   :  { %62 = vst.msk [vmem:[#allocation2] sm:$0xff] %vm44_vm0, %v59_v14  ;;  %63 = vst.msk [vmem:[#allocation2 + $0x8] sm:$0xff] %vm44_vm0, %v60_v17 }
  0x29   :  { %68 = vst.msk [vmem:[#allocation3] sm:$0xff] %vm44_vm0, %v66_v16  ;;  %69 = vst.msk [vmem:[#allocation3 + $0x8] sm:$0xff] %vm44_vm0, %v67_v18 }
  0x2e   :  { %v107_v19 = vld [vmem:[#allocation4] sm:$0xff]  ;;  %v108_v20 = vld [vmem:[#allocation4 + $0x8] sm:$0xff] }
  0x2f   :  { %v109_v21 = vsel %vm44_vm0, %v107_v19, 0.0  ;;  %v110_v22 = vsel %vm44_vm0, %v108_v20, 0.0  ;;  %v79_v23 = vld [vmem:[#allocation2] sm:$0xff]  ;;  %v80_v26 = vld [vmem:[#allocation2 + $0x8] sm:$0xff] }
  0x30   :  { %v93_v24 = vld [vmem:[#allocation3] sm:$0xff]  ;;  %v111_v25 = vadd.f32 %v110_v22, %v109_v21  ;;  %v81_v27 = vsel %vm44_vm0, %v79_v23, 0.0  ;;  %v94_v28 = vld [vmem:[#allocation3 + $0x8] sm:$0xff]  ;;  %v82_v29 = vsel %vm44_vm0, %v80_v26, 0.0 }
  0x31   :  { %v95_v30 = vsel %vm44_vm0, %v93_v24, 0.0  ;;  %v96_v31 = vsel %vm44_vm0, %v94_v28, 0.0  ;;  %v83_v32 = vadd.f32 %v82_v29, %v81_v27 }
  0x32   :  { %112 = vadd.xlane.f32.xlu1 %v111_v25  ;;  %v97_v33 = vadd.f32 %v96_v31, %v95_v30 }
  0x33   :  { %84 = vadd.xlane.f32.xlu0 %v83_v32 }
  0x37   :  { %98 = vadd.xlane.f32.xlu0 %v97_v33 }
  0xbb   :  { %v113_v34 = vpop.xlane.xlu1 %112 }
  0xbc   :  { %v114_v35 = vrot.slane %v113_v34, 4  ;;  %v85_v36 = vpop.xlane.xlu0 %84 }
  0xbd   :  { %v86_v38 = vrot.slane %v85_v36, 4 }
  0xbe   :  { %v115_v37 = vadd.f32 %v114_v35, %v113_v34 }
  0xbf   :  { %v87_v39 = vadd.f32 %v86_v38, %v85_v36 }
  0xc0   :  { %v116_v40 = vrot.slane %v115_v37, 2  ;;  %v99_v41 = vpop.xlane.xlu0 %98 }
  0xc1   :  { %v88_v42 = vrot.slane %v87_v39, 2  ;;  %v100_v43 = vrot.slane %v99_v41, 4 }
  0xc2   :  { %v117_v46 = vadd.f32 %v116_v40, %v115_v37 }
  0xc3   :  { %v101_v44 = vadd.f32 %v100_v43, %v99_v41  ;;  %v89_v45 = vadd.f32 %v88_v42, %v87_v39 }
  0xc4   :  { %v118_v51 = vrot.slane %v117_v46, 1 }
  0xc5   :  { %v102_v47 = vrot.slane %v101_v44, 2  ;;  %v90_v48 = vrot.slane %v89_v45, 1 }
  0xc6   :  { %v119_v54 = vadd.f32 %v118_v51, %v117_v46 }
  0xc7   :  { %v103_v49 = vadd.f32 %v102_v47, %v101_v44  ;;  %v91_v50 = vadd.f32 %v90_v48, %v89_v45 }
  0xc9   :  { %146 = vpush %v91_v50  ;;  %v104_v52 = vrot.slane %v103_v49, 1 }
  0xcb   :  { %v105_v53 = vadd.f32 %v104_v52, %v103_v49 }
  0xcd   :  { %148 = vpush %v105_v53 }
  0xce   :  { %150 = vpush %v119_v54 }
  0xfa   :  { %s147_s0 = spop %146 }
  0xfb   :  { %s121_s24 = smul.f32 2.0, %s147_s0 }
  0xfe   :  { %s149_s1 = spop %148 }
  0xff   :  { %s151_s21 = spop %150 }
 0x100   :  { %s122_s22 = sadd.f32 %s151_s21, %s149_s1 }
 0x102   :  { %s123_s23 = sadd.f32 1e-08, %s122_s22 }
 0x104   :  { %v124_v55 = vstv %s123_s23 }
 0x105   :  { %160 = vrcp.f32 %v124_v55 }
 0x112   :  { %v161_v56 = vpop.eup %160 }
 0x113   :  { %152 = vpush %v161_v56 }
 0x144   :  { %s153_s25 = spop %152 }
 0x145   :  { %s127_s26 = smul.f32 %s153_s25, %s121_s24 }
 0x147   :  { %s128_s27 = ssub.f32 1.0, %s127_s26 }
 0x149   :  { %130 = sst [smem:[#allocation10]] %s128_s27 }
 0x14a   :  { %138 = dma.smem_to_hbm %s221_s28, 16, %s266_s2, [#allocation7]  }
 0x14b   :  { %214 = dma.done.wait [#allocation7], 16  }
 0x14c   :  { %215 = vsyncadd [#allocation7], 4294967280 }
 0x14d   :  { %142 = sfence }
 0x14e   :  { %143 = vsyncpa [#allocation6], 1 }
 0x14f   :  { %144 = vsyncpa [#allocation9], 1 }
 0x150   :  { %145 = vsyncpa [#allocation7], 1 }

</bundles_post_ra>
